<compile_context>
chip_gen: v7x
topology: tpu7x:2x2x1
jax: 0.10.0
libtpu: 0.0.40
codegen_flags: <defaults>
</compile_context>

<pallas_src>
import numpy as np
import jax
import jax.numpy as jnp
from jax.experimental import pallas as pl
from jax.experimental.pallas import tpu as pltpu


def mha_kernel(w_ref, b_ref, v_ref, out_ref, attn_ref):
    # Block shapes (grid axis = batch tile b):
    #   w_ref   : (H, d_in)        folded per-head weights (query & 1/temp folded in)
    #   b_ref   : (H, 1)           folded per-head bias, f32
    #   v_ref   : (bb, S, d_in)    batch tile of the input
    #   out_ref : (H, bb, dv)      per-head outputs, dv = d_in // H
    #   attn_ref: (bb, H, S)       attention probabilities (f32)
    bb, S, d_in = v_ref.shape
    H = w_ref.shape[0]
    dv = d_in // H

    v_blk = v_ref[...]                                          # (bb, S, d_in)
    w_b = jnp.broadcast_to(w_ref[...], (bb, H, d_in))           # shared across batch

    # Scores for all heads in one batched MXU matmul: scores[b,h,s] = v[b,s,:].w_fold[h]
    scores = jnp.einsum('bqd,bkd->bqk', w_b, v_blk,
                        preferred_element_type=jnp.float32)     # (bb, H, S)
    scores = scores + b_ref[...][None, :, :]                    # folded bias / temperature

    # Softmax over the sequence axis (last, lane-aligned).
    m = jnp.max(scores, axis=-1, keepdims=True)
    e = jnp.exp(scores - m)
    denom = jnp.sum(e, axis=-1, keepdims=True)
    attn = e * pl.reciprocal(denom, approx=False)               # (bb, H, S), f32
    # TODO(synk): attn_dropout / pad_mask not implemented (eval, pad_mask=None path).
    attn_ref[...] = attn.astype(attn_ref.dtype)

    # Per-head value contraction on the MXU, batched over the batch tile:
    #   out[h, b, :] = attn[b, h, :] @ v[b, :, h*dv:(h+1)*dv]
    attn_c = attn.astype(v_blk.dtype)
    for h in range(H):                                          # static unroll, H is small
        a_h = attn_c[:, h:h + 1, :]                             # (bb, 1, S)
        vh = v_blk[:, :, h * dv:(h + 1) * dv]                   # (bb, S, dv) static slice
        o_h = jnp.einsum('bqk,bkd->bqd', a_h, vh,
                         preferred_element_type=jnp.float32)    # (bb, 1, dv)
        out_ref[h] = o_h[:, 0, :].astype(out_ref.dtype)


def multi_head_attention(v, Q, Wk, bk, *, n_head, d_k, block_b=None):
    """v: (B, S, d_in); Q: (n_head, d_k); Wk: (n_head*d_k, d_in); bk: (n_head*d_k,).

    Returns (out, attn) with out: (n_head, B, d_in//n_head), attn: (n_head, B, S).
    """
    B, S, d_in = v.shape
    assert d_in % n_head == 0
    dv = d_in // n_head
    temperature = float(np.power(d_k, 0.5))

    if block_b is None:
        block_b = B if (B <= 128 or B % 128 != 0) else 128
    assert B % block_b == 0
    grid = (B // block_b,)

    # --- Fold query and 1/temperature into the key projection (plain-JAX glue) ---
    #   scores[h,b,s] = q_h . (Wk_h v[b,s] + bk_h) / temp = v[b,s] . w_fold[h] + b_fold[h]
    # Computed with exact f32 element-wise ops (tiny: H*d_k*d_in elements).
    Wk_r = Wk.reshape(n_head, d_k, d_in).astype(jnp.float32)
    bk_r = bk.reshape(n_head, d_k).astype(jnp.float32)
    Qf = Q.astype(jnp.float32)
    w_fold = (jnp.sum(Wk_r * Qf[:, :, None], axis=1) / temperature).astype(v.dtype)  # (H, d_in)
    b_fold = jnp.sum(bk_r * Qf, axis=1, keepdims=True) / temperature                  # (H, 1) f32

    out, attn_bhs = pl.pallas_call(
        mha_kernel,
        out_shape=(
            jax.ShapeDtypeStruct((n_head, B, dv), v.dtype),      # per-head outputs
            jax.ShapeDtypeStruct((B, n_head, S), jnp.float32),   # attn (kept in f32)
        ),
        grid=grid,
        in_specs=[
            pl.BlockSpec((n_head, d_in), lambda b: (0, 0)),          # w_fold (shared)
            pl.BlockSpec((n_head, 1), lambda b: (0, 0)),             # b_fold (shared)
            pl.BlockSpec((block_b, S, d_in), lambda b: (b, 0, 0)),   # v batch tile
        ],
        out_specs=(
            pl.BlockSpec((n_head, block_b, dv), lambda b: (0, b, 0)),
            pl.BlockSpec((block_b, n_head, S), lambda b: (b, 0, 0)),
        ),
        compiler_params=pltpu.CompilerParams(
            dimension_semantics=("parallel",),          # batch tiles shard across cores
            vmem_limit_bytes=32 * 1024 * 1024),
    )(w_fold, b_fold, v)

    attn = jnp.transpose(attn_bhs, (1, 0, 2))            # (n_head, B, S) to match the module
    return out, attn


def reference(v, Q, Wk, bk, *, n_head, d_k):
    """Pure-JAX reference mirroring the PyTorch forward (eval, pad_mask=None)."""
    B, S, d_in = v.shape
    dv = d_in // n_head
    k = v @ Wk.T + bk                                             # (B, S, n_head*d_k)
    k = k.reshape(B, S, n_head, d_k).transpose(2, 0, 1, 3)        # (H, B, S, d_k)
    scores = jnp.einsum('hk,hbsk->hbs', Q, k) / np.power(d_k, 0.5)
    attn = jax.nn.softmax(scores, axis=-1)                        # (H, B, S)
    vh = v.reshape(B, S, n_head, dv).transpose(2, 0, 1, 3)        # (H, B, S, dv)
    out = jnp.einsum('hbs,hbsd->hbd', attn, vh)                   # (H, B, dv)
    return out, attn


if __name__ == "__main__":
    # Small shapes consistent with the module.
    n_head, d_k, d_in = 4, 8, 32
    B, S = 2, 8

    key = jax.random.PRNGKey(0)
    k1, k2, k3, k4 = jax.random.split(key, 4)

    # Deterministic parameter init mirroring the module's __init__ distributions.
    Q = jax.random.normal(k1, (n_head, d_k), jnp.float32) * np.sqrt(2.0 / d_k)
    Wk = jax.random.normal(k2, (n_head * d_k, d_in), jnp.float32) * np.sqrt(2.0 / d_k)
    bound = 1.0 / np.sqrt(d_in)   # default nn.Linear bias init
    bk = jax.random.uniform(k3, (n_head * d_k,), jnp.float32,
                            minval=-bound, maxval=bound)
    v = jax.random.normal(k4, (B, S, d_in), jnp.float32)

    out, attn = multi_head_attention(v, Q, Wk, bk, n_head=n_head, d_k=d_k)
    out = jax.block_until_ready(out)
    attn = jax.block_until_ready(attn)

    out_exp, attn_exp = reference(v, Q, Wk, bk, n_head=n_head, d_k=d_k)
    np.testing.assert_allclose(np.asarray(out), np.asarray(out_exp), rtol=1e-4, atol=1e-5)
    np.testing.assert_allclose(np.asarray(attn), np.asarray(attn_exp), rtol=1e-4, atol=1e-5)

    print("KERNEL_OK")
</pallas_src>

<mosaic_0001>
module attributes {stable_mosaic.version = 11 : i64} {
  func.func @mha_kernel(%arg0: i32, %arg1: memref<4x32xf32, #tpu.memory_space<vmem>>, %arg2: memref<4x1xf32, #tpu.memory_space<vmem>>, %arg3: memref<2x8x32xf32, #tpu.memory_space<vmem>>, %arg4: memref<4x2x8xf32, #tpu.memory_space<vmem>>, %arg5: memref<2x4x8xf32, #tpu.memory_space<vmem>>) attributes {dimension_semantics = [#tpu.dimension_semantics<parallel>], iteration_bounds = array<i64: 1>, scalar_prefetch = 0 : i64, scratch_operands = 0 : i64, tpu.core_type = #tpu.core_type<tc>, window_params = [{pipeline_mode = #tpu.pipeline_mode<synchronous>, transform_indices = @transform_0, window_bounds = array<i64: 4, 32>}, {pipeline_mode = #tpu.pipeline_mode<synchronous>, transform_indices = @transform_1, window_bounds = array<i64: 4, 1>}, {transform_indices = @transform_2, window_bounds = array<i64: 2, 8, 32>}, {transform_indices = @transform_3, window_bounds = array<i64: 4, 2, 8>}, {transform_indices = @transform_4, window_bounds = array<i64: 2, 4, 8>}]} {
    %c0 = arith.constant 0 : index
    %c0_0 = arith.constant 0 : index
    %c0_1 = arith.constant 0 : index
    %0 = vector.load %arg3[%c0, %c0_0, %c0_1] : memref<2x8x32xf32, #tpu.memory_space<vmem>>, vector<2x8x32xf32>
    %c0_2 = arith.constant 0 : index
    %c0_3 = arith.constant 0 : index
    %1 = vector.load %arg1[%c0_2, %c0_3] : memref<4x32xf32, #tpu.memory_space<vmem>>, vector<4x32xf32>
    %2 = vector.shape_cast %1 : vector<4x32xf32> to vector<1x4x32xf32>
    %3 = vector.broadcast %2 : vector<1x4x32xf32> to vector<2x4x32xf32>
    "tpu.trace_start"() <{level = 10 : i32, message = "bqd,bkd->bqk"}> : () -> ()
    %cst = arith.constant dense<0.000000e+00> : vector<2x4x8xf32>
    %4 = tpu.matmul %3, %0, %cst {dimension_numbers = #tpu.dot_dimension_numbers<[2], [2], [1], [1], [0, 0, 0, 1, 1, 1], [0], [0]>} : vector<2x4x32xf32>, vector<2x8x32xf32>, vector<2x4x8xf32> -> vector<2x4x8xf32>
    "tpu.trace_stop"() : () -> ()
    %c0_4 = arith.constant 0 : index
    %c0_5 = arith.constant 0 : index
    %5 = vector.load %arg2[%c0_4, %c0_5] : memref<4x1xf32, #tpu.memory_space<vmem>>, vector<4x1xf32>
    %6 = vector.shape_cast %5 : vector<4x1xf32> to vector<1x4x1xf32>
    %7 = vector.broadcast %6 : vector<1x4x1xf32> to vector<2x4x8xf32>
    %8 = arith.addf %4, %7 : vector<2x4x8xf32>
    %cst_6 = arith.constant dense<0xFF800000> : vector<2x4xf32>
    %9 = vector.multi_reduction <maximumf>, %8, %cst_6 [2] : vector<2x4x8xf32> to vector<2x4xf32>
    %10 = vector.shape_cast %9 : vector<2x4xf32> to vector<2x4x1xf32>
    %11 = vector.broadcast %10 : vector<2x4x1xf32> to vector<2x4x8xf32>
    %12 = arith.subf %8, %11 : vector<2x4x8xf32>
    %13 = math.exp %12 : vector<2x4x8xf32>
    %cst_7 = arith.constant dense<0.000000e+00> : vector<2x4xf32>
    %14 = vector.multi_reduction <add>, %13, %cst_7 [2] : vector<2x4x8xf32> to vector<2x4xf32>
    %15 = vector.shape_cast %14 : vector<2x4xf32> to vector<2x4x1xf32>
    %16 = tpu.reciprocal %15 : vector<2x4x1xf32> -> vector<2x4x1xf32>
    %17 = vector.broadcast %16 : vector<2x4x1xf32> to vector<2x4x8xf32>
    %18 = arith.mulf %13, %17 : vector<2x4x8xf32>
    %c0_8 = arith.constant 0 : index
    %c0_9 = arith.constant 0 : index
    %c0_10 = arith.constant 0 : index
    %19 = vector.load %arg5[%c0_8, %c0_9, %c0_10] : memref<2x4x8xf32, #tpu.memory_space<vmem>>, vector<2x4x8xf32>
    tpu.vector_store %arg5[%c0_8, %c0_9, %c0_10], %18 {strides = array<i32>} : memref<2x4x8xf32, #tpu.memory_space<vmem>>, vector<2x4x8xf32>,
    %20 = vector.extract_strided_slice %18 {offsets = [0, 0, 0], sizes = [2, 1, 8], strides = [1, 1, 1]} : vector<2x4x8xf32> to vector<2x1x8xf32>
    %21 = vector.extract_strided_slice %0 {offsets = [0, 0, 0], sizes = [2, 8, 8], strides = [1, 1, 1]} : vector<2x8x32xf32> to vector<2x8x8xf32>
    "tpu.trace_start"() <{level = 10 : i32, message = "bqk,bkd->bqd"}> : () -> ()
    %cst_11 = arith.constant dense<0.000000e+00> : vector<2x1x8xf32>
    %22 = tpu.matmul %20, %21, %cst_11 {dimension_numbers = #tpu.dot_dimension_numbers<[2], [1], [1], [2], [0, 0, 0, 1, 1, 2], [0], [0]>} : vector<2x1x8xf32>, vector<2x8x8xf32>, vector<2x1x8xf32> -> vector<2x1x8xf32>
    "tpu.trace_stop"() : () -> ()
    %23 = vector.shape_cast %22 : vector<2x1x8xf32> to vector<2x8xf32>
    %c0_12 = arith.constant 0 : index
    %c0_13 = arith.constant 0 : index
    %c0_14 = arith.constant 0 : index
    %24 = vector.load %arg4[%c0_12, %c0_13, %c0_14] : memref<4x2x8xf32, #tpu.memory_space<vmem>>, vector<1x2x8xf32>
    %25 = vector.shape_cast %24 : vector<1x2x8xf32> to vector<2x8xf32>
    %26 = vector.shape_cast %23 : vector<2x8xf32> to vector<1x2x8xf32>
    tpu.vector_store %arg4[%c0_12, %c0_13, %c0_14], %26 {strides = array<i32>} : memref<4x2x8xf32, #tpu.memory_space<vmem>>, vector<1x2x8xf32>,
    %27 = vector.extract_strided_slice %18 {offsets = [0, 1, 0], sizes = [2, 1, 8], strides = [1, 1, 1]} : vector<2x4x8xf32> to vector<2x1x8xf32>
    %28 = vector.extract_strided_slice %0 {offsets = [0, 0, 8], sizes = [2, 8, 8], strides = [1, 1, 1]} : vector<2x8x32xf32> to vector<2x8x8xf32>
    "tpu.trace_start"() <{level = 10 : i32, message = "bqk,bkd->bqd"}> : () -> ()
    %cst_15 = arith.constant dense<0.000000e+00> : vector<2x1x8xf32>
    %29 = tpu.matmul %27, %28, %cst_15 {dimension_numbers = #tpu.dot_dimension_numbers<[2], [1], [1], [2], [0, 0, 0, 1, 1, 2], [0], [0]>} : vector<2x1x8xf32>, vector<2x8x8xf32>, vector<2x1x8xf32> -> vector<2x1x8xf32>
    "tpu.trace_stop"() : () -> ()
    %30 = vector.shape_cast %29 : vector<2x1x8xf32> to vector<2x8xf32>
    %c1 = arith.constant 1 : index
    %c0_16 = arith.constant 0 : index
    %c0_17 = arith.constant 0 : index
    %31 = vector.load %arg4[%c1, %c0_16, %c0_17] : memref<4x2x8xf32, #tpu.memory_space<vmem>>, vector<1x2x8xf32>
    %32 = vector.shape_cast %31 : vector<1x2x8xf32> to vector<2x8xf32>
    %33 = vector.shape_cast %30 : vector<2x8xf32> to vector<1x2x8xf32>
    tpu.vector_store %arg4[%c1, %c0_16, %c0_17], %33 {strides = array<i32>} : memref<4x2x8xf32, #tpu.memory_space<vmem>>, vector<1x2x8xf32>,
    %34 = vector.extract_strided_slice %18 {offsets = [0, 2, 0], sizes = [2, 1, 8], strides = [1, 1, 1]} : vector<2x4x8xf32> to vector<2x1x8xf32>
    %35 = vector.extract_strided_slice %0 {offsets = [0, 0, 16], sizes = [2, 8, 8], strides = [1, 1, 1]} : vector<2x8x32xf32> to vector<2x8x8xf32>
    "tpu.trace_start"() <{level = 10 : i32, message = "bqk,bkd->bqd"}> : () -> ()
    %cst_18 = arith.constant dense<0.000000e+00> : vector<2x1x8xf32>
    %36 = tpu.matmul %34, %35, %cst_18 {dimension_numbers = #tpu.dot_dimension_numbers<[2], [1], [1], [2], [0, 0, 0, 1, 1, 2], [0], [0]>} : vector<2x1x8xf32>, vector<2x8x8xf32>, vector<2x1x8xf32> -> vector<2x1x8xf32>
    "tpu.trace_stop"() : () -> ()
    %37 = vector.shape_cast %36 : vector<2x1x8xf32> to vector<2x8xf32>
    %c2 = arith.constant 2 : index
    %c0_19 = arith.constant 0 : index
    %c0_20 = arith.constant 0 : index
    %38 = vector.load %arg4[%c2, %c0_19, %c0_20] : memref<4x2x8xf32, #tpu.memory_space<vmem>>, vector<1x2x8xf32>
    %39 = vector.shape_cast %38 : vector<1x2x8xf32> to vector<2x8xf32>
    %40 = vector.shape_cast %37 : vector<2x8xf32> to vector<1x2x8xf32>
    tpu.vector_store %arg4[%c2, %c0_19, %c0_20], %40 {strides = array<i32>} : memref<4x2x8xf32, #tpu.memory_space<vmem>>, vector<1x2x8xf32>,
    %41 = vector.extract_strided_slice %18 {offsets = [0, 3, 0], sizes = [2, 1, 8], strides = [1, 1, 1]} : vector<2x4x8xf32> to vector<2x1x8xf32>
    %42 = vector.extract_strided_slice %0 {offsets = [0, 0, 24], sizes = [2, 8, 8], strides = [1, 1, 1]} : vector<2x8x32xf32> to vector<2x8x8xf32>
    "tpu.trace_start"() <{level = 10 : i32, message = "bqk,bkd->bqd"}> : () -> ()
    %cst_21 = arith.constant dense<0.000000e+00> : vector<2x1x8xf32>
    %43 = tpu.matmul %41, %42, %cst_21 {dimension_numbers = #tpu.dot_dimension_numbers<[2], [1], [1], [2], [0, 0, 0, 1, 1, 2], [0], [0]>} : vector<2x1x8xf32>, vector<2x8x8xf32>, vector<2x1x8xf32> -> vector<2x1x8xf32>
    "tpu.trace_stop"() : () -> ()
    %44 = vector.shape_cast %43 : vector<2x1x8xf32> to vector<2x8xf32>
    %c3 = arith.constant 3 : index
    %c0_22 = arith.constant 0 : index
    %c0_23 = arith.constant 0 : index
    %45 = vector.load %arg4[%c3, %c0_22, %c0_23] : memref<4x2x8xf32, #tpu.memory_space<vmem>>, vector<1x2x8xf32>
    %46 = vector.shape_cast %45 : vector<1x2x8xf32> to vector<2x8xf32>
    %47 = vector.shape_cast %44 : vector<2x8xf32> to vector<1x2x8xf32>
    tpu.vector_store %arg4[%c3, %c0_22, %c0_23], %47 {strides = array<i32>} : memref<4x2x8xf32, #tpu.memory_space<vmem>>, vector<1x2x8xf32>,
    return
  }
  func.func @transform_0(%arg0: i32) -> (i32, i32) {
    %c0_i32 = arith.constant 0 : i32
    %c0_i32_0 = arith.constant 0 : i32
    %c0_i32_1 = arith.constant 0 : i32
    return %c0_i32, %c0_i32_0 : i32, i32
  }
  func.func @transform_1(%arg0: i32) -> (i32, i32) {
    %c0_i32 = arith.constant 0 : i32
    %c0_i32_0 = arith.constant 0 : i32
    %c0_i32_1 = arith.constant 0 : i32
    return %c0_i32, %c0_i32_0 : i32, i32
  }
  func.func @transform_2(%arg0: i32) -> (i32, i32, i32) {
    %c0_i32 = arith.constant 0 : i32
    %c0_i32_0 = arith.constant 0 : i32
    %c0_i32_1 = arith.constant 0 : i32
    return %arg0, %c0_i32, %c0_i32_0 : i32, i32, i32
  }
  func.func @transform_3(%arg0: i32) -> (i32, i32, i32) {
    %c0_i32 = arith.constant 0 : i32
    %c0_i32_0 = arith.constant 0 : i32
    %c0_i32_1 = arith.constant 0 : i32
    return %c0_i32, %arg0, %c0_i32_0 : i32, i32, i32
  }
  func.func @transform_4(%arg0: i32) -> (i32, i32, i32) {
    %c0_i32 = arith.constant 0 : i32
    %c0_i32_0 = arith.constant 0 : i32
    %c0_i32_1 = arith.constant 0 : i32
    return %arg0, %c0_i32, %c0_i32_0 : i32, i32, i32
  }
}

</mosaic_0001>

<bundles_post_ra>
// kernel: tpu_custom_call.1
= control target key start
LH: loop header
LB: loop body
LE: loop exit
PB: predicated region body
PF: predicated region fallthrough
CT: control target
= control target key end

     0   :  { %10 = vsyncpa [#allocation3], 0  ;;  %s1193_s0 = inlined_call_operand.vmem [shape: f32[4,32], index: 0, kind: input, shape index: {}]   ;;  %s1194_s1 = inlined_call_operand.vmem [shape: f32[4,1], index: 1, kind: input, shape index: {}]   ;;  %s1195_s2 = inlined_call_operand.hbm [shape: f32[2,8,32], index: 2, kind: input, shape index: {}]   ;;  %s1196_s3 = inlined_call_operand.hbm [shape: f32[4,2,8], index: 3, kind: output, shape index: {0}]   ;;  %s1197_s4 = inlined_call_operand.hbm [shape: f32[2,4,8], index: 4, kind: output, shape index: {1}]  }
   0x1   :  { %11 = vsyncpa [#allocation4], 0 }
   0x2   :  { %12 = vsyncpa [#allocation7], 0  ;;  %s1059_s15 = smov [#allocation2]   ;;  %s987_s19 = scalar_lea.hbm %s1195_s2, 256 }
   0x3   :  { %s22_s16 = sshll.u32 %s1059_s15, 4  ;;  %p988_p0 = scmp.ne.s32.totalorder %s1195_s2, %s987_s19  ;;  %s23_s16 = int_to_ptr.vmem [resolvable:$true] %s22_s16 }
   0x4   :  { %p991_p1 = scmp.lt.u32.totalorder %s987_s19, %s1195_s2 }
   0x6   :  { %p993_p2 = pnand %p991_p1, %p988_p0 }
   0x8   :  { %996 = shalt.err (!%p993_p2)
}
   0x9   :  { %s997_s24 = scalar_lea.vmem %s23_s16, 256  ;;  %p1002_p4 = scmp.lt.s32.totalorder %s23_s16, %s23_s16 }
   0xa   :  { %p998_p3 = scmp.ne.s32.totalorder %s23_s16, %s997_s24  ;;  %p1003_p5 = scmp.lt.s32.totalorder %s997_s24, %s997_s24 }
   0xc   :  { %p1004_p6 = por %p1003_p5, %p1002_p4 }
   0xe   :  { %p1005_p7 = pnand %p1004_p6, %p998_p3 }
  0x10   :  { %1008 = shalt.err (!%p1005_p7)
}
  0x11   :  { %s1060_s25 = smov 128   ;;  %s1061_s26 = smov 8  }
  0x12   :  { %28 = dma.hbm_to_vmem [thread:$0]  %s1195_s2, 256, %s23_s16, [#allocation3], %s1060_s25, %s1060_s25, %s1061_s26  }
  0x13   :  { %1053 = dma.done.wait [#allocation3], 256  }
  0x14   :  { %1054 = vsyncadd [#allocation3], 4294967040  ;;  %v1062_v0 = vmov 0.0   ;;  %vm1063_vm0 = vmmov 0   ;;  %v1064_v1 = vmov 0   ;;  %vm41_vm1 = vcmask 261120  }
  0x15   :  { %913 = vmatprep.subr.mxu0 %v1062_v0  ;;  %918 = vmatprep.subr.mxu1 %v1062_v0  ;;  %v32_v2 = vld [vmem:[#allocation2] sm:$0xff]  ;;  %v33_v3 = vld [vmem:[#allocation2 + $0x8] sm:$0xff]  ;;  %vm191_vm2 = vcmask 60416   ;;  %s1067_s6 = smov 104   ;;  %vm216_vm3 = vcmask 64512   ;;  %s1068_s7 = smov [#allocation6]  }
  0x16   :  { %915 = vmatprep.mubr.msk.f32.mxu0 %vm1063_vm0, %v1062_v0  ;;  %920 = vmatprep.mubr.msk.f32.mxu1 %vm1063_vm0, %v1062_v0  ;;  %v34_v4 = vld [vmem:[%s1193_s0] sm:$0xf]  ;;  %s1065_s0 = smov 120   ;;  %s865_s8 = sshll.u32 %s1068_s7, 4  ;;  %s866_s8 = int_to_ptr.vmem [resolvable:$true] %s865_s8 }
  0x17   :  { %978 = vset.pattern.permute.xlu0 %v1064_v1  ;;  %914 = vmatpush3.xpose.msk.msra.mxu0 %vm41_vm1, %v32_v2  ;;  %v35_v5 = vld [vmem:[%s1194_s1] sm:$0xf]  ;;  %s1066_s1 = smov 112   ;;  %s1009_s9 = scalar_lea.vmem %s866_s8, 128 }
  0x18   :  { %919 = vmatpush3.xpose.msk.msra.mxu1 %vm41_vm1, %v33_v3  ;;  %38 = vperm.xlu0 %978, %v35_v5   ;;  %p1010_p8 = scmp.ne.s32.totalorder %s866_s8, %s1009_s9  ;;  %p1014_p9 = scmp.lt.s32.totalorder %s866_s8, %s866_s8 }
  0x19   :  { %928 = vmatprep.subr.mxu1 %v1062_v0  ;;  %923 = vmatprep.subr.mxu0 %v1062_v0  ;;  %p1015_p10 = scmp.lt.s32.totalorder %s1009_s9, %s1009_s9 }
  0x1a   :  { %916 = vmatmul.mubr.msk.f32.vlgmr.msra.gmra.mrb[0].mxu0 %vm41_vm1, %v34_v4 }
  0x1b   :  { %921 = vmatmul.mubr.msk.f32.vlgmr.msra.gmra.mrb[0].mxu1 %vm41_vm1, %v34_v4  ;;  %924 = vmatpush3.msra.mxu0 %v32_v2  ;;  %p1016_p11 = por %p1015_p10, %p1014_p9 }
  0x1c   :  { %929 = vmatpush3.msra.mxu1 %v33_v3  ;;  %930 = vmatprep.mubr.msk.f32.mxu1 %vm1063_vm0, %v1062_v0 }
  0x1d   :  { %938 = vmatprep.subr.mxu1 %v1062_v0  ;;  %925 = vmatprep.mubr.msk.f32.mxu0 %vm1063_vm0, %v1062_v0  ;;  %p1017_p12 = pnand %p1016_p11, %p1010_p8 }
  0x1e   :  { %933 = vmatprep.subr.mxu0 %v1062_v0 }
  0x97   :  { %v39_v6 = vpop.permute.xlu0 %38 }
  0xed   :  { %v114_v7 = vpop.f32.mrb[0].mxu0 }
  0xee   :  { %v187_v8 = vpop.f32.mrb[0].mxu1  ;;  %v115_v9 = vadd.f32 %v114_v7, %v39_v6  ;;  %v917_v12 = vpop.f32.mrb[1].mxu0 }
  0xef   :  { %v188_v10 = vadd.f32 %v187_v8, %v39_v6  ;;  %v922_v11 = vpop.f32.mrb[1].mxu1 }
  0xf0   :  { %v192_v14 = vsel %vm191_vm2, %v115_v9, -inf }
  0xf1   :  { %v195_v13 = vsel %vm191_vm2, %v188_v10, -inf  ;;  %193 = vmax.xlane.f32.xlu1 %v192_v14 }
  0xf2   :  { %196 = vmax.xlane.f32.xlu0 %v195_v13 }
 0x102   :  { %448 = vrot.lane.b32.xlu1 %v33_v3, %s1065_s0 }
 0x106   :  { %372 = vrot.lane.b32.xlu1 %v32_v2, %s1065_s0 }
 0x108   :  { %531 = vrot.lane.b32.xlu0 %v32_v2, %s1066_s1 }
 0x10a   :  { %607 = vrot.lane.b32.xlu1 %v33_v3, %s1066_s1 }
 0x17e   :  { %v194_v16 = vpop.xlane.xlu1 %193 }
 0x17f   :  { %v197_v15 = vpop.xlane.xlu0 %196  ;;  %v198_v18 = vsub.f32 %v115_v9, %v194_v16 }
 0x180   :  { %v199_v17 = vsub.f32 %v188_v10, %v197_v15 }
 0x181   :  { %v200_v20 = vmul.f32 1.442695, %v198_v18 }
 0x182   :  { %v202_v19 = vmul.f32 1.442695, %v199_v17  ;;  %v449_v25 = vpop.permute.xlu1 %448 }
 0x183   :  { %v532_v36 = vpop.permute.xlu0 %531 }
 0x184   :  { %979 = vpow2.f32 %v202_v19 }
 0x185   :  { %981 = vpow2.f32 %v200_v20 }
 0x186   :  { %v373_v26 = vpop.permute.xlu1 %372 }
 0x18a   :  { %v608_v27 = vpop.permute.xlu1 %607 }
 0x18e   :  { %v980_v21 = vpop.eup %979 }
 0x18f   :  { %v207_v22 = vsel %vm191_vm2, %v980_v21, 0.0  ;;  %v982_v23 = vpop.eup %981 }
 0x190   :  { %208 = vadd.xlane.f32.xlu1 %v207_v22  ;;  %v204_v24 = vsel %vm191_vm2, %v982_v23, 0.0 }
 0x194   :  { %205 = vadd.xlane.f32.xlu1 %v204_v24 }
 0x1a5   :  { %766 = vrot.lane.b32.xlu1 %v33_v3, %s1067_s6 }
 0x1a9   :  { %690 = vrot.lane.b32.xlu1 %v32_v2, %s1067_s6 }
 0x21d   :  { %v209_v28 = vpop.xlane.xlu1 %208 }
 0x21e   :  { %983 = vrcp.f32 %v209_v28 }
 0x221   :  { %v206_v29 = vpop.xlane.xlu1 %205 }
 0x222   :  { %985 = vrcp.f32 %v206_v29 }
 0x225   :  { %v767_v35 = vpop.permute.xlu1 %766 }
 0x228   :  { %v984_v30 = vpop.eup %983 }
 0x229   :  { %v213_v31 = vmul.f32 %v984_v30, %v980_v21  ;;  %v691_v39 = vpop.permute.xlu1 %690 }
 0x22b   :  { %215 = vst.msk [vmem:[#allocation6 + $0x4] sm:$0xf] %vm191_vm2, %v213_v31  ;;  %931 = vmatmul.mubr.msk.f32.vlgmr.msra.gmra.mrb[2].mxu1 %vm216_vm3, %v213_v31  ;;  %v447_v34 = vrot.slane %v213_v31, 1  ;;  %v606_v38 = vrot.slane %v213_v31, 2  ;;  %v765_v41 = vrot.slane %v213_v31, 3 }
 0x22c   :  { %v986_v32 = vpop.eup %985  ;;  %939 = vmatpush3.msra.mxu1 %v449_v25  ;;  %940 = vmatprep.mubr.msk.f32.mxu1 %vm1063_vm0, %v1062_v0 }
 0x22d   :  { %v212_v33 = vmul.f32 %v986_v32, %v982_v23  ;;  %948 = vmatprep.subr.mxu1 %v1062_v0 }
 0x22f   :  { %214 = vst.msk [vmem:[#allocation6] sm:$0xf] %vm191_vm2, %v212_v33  ;;  %926 = vmatmul.mubr.msk.f32.vlgmr.msra.gmra.mrb[2].mxu0 %vm216_vm3, %v212_v33  ;;  %941 = vmatmul.mubr.msk.f32.vlgmr.msra.gmra.mrb[4].mxu1 %vm216_vm3, %v447_v34  ;;  %v371_v37 = vrot.slane %v212_v33, 1  ;;  %v530_v40 = vrot.slane %v212_v33, 2  ;;  %v689_v42 = vrot.slane %v212_v33, 3 }
 0x230   :  { %934 = vmatpush3.msra.mxu0 %v373_v26  ;;  %949 = vmatpush3.msra.mxu1 %v608_v27 }
 0x231   :  { %935 = vmatprep.mubr.msk.f32.mxu0 %vm1063_vm0, %v1062_v0  ;;  %943 = vmatprep.subr.mxu0 %v1062_v0 }
 0x232   :  { %950 = vmatprep.mubr.msk.f32.mxu1 %vm1063_vm0, %v1062_v0  ;;  %958 = vmatprep.subr.mxu1 %v1062_v0 }
 0x233   :  { %936 = vmatmul.mubr.msk.f32.vlgmr.msra.gmra.mrb[4].mxu0 %vm216_vm3, %v371_v37  ;;  %951 = vmatmul.mubr.msk.f32.vlgmr.msra.gmra.mrb[6].mxu1 %vm216_vm3, %v606_v38 }
 0x234   :  { %944 = vmatpush3.msra.mxu0 %v532_v36  ;;  %959 = vmatpush3.msra.mxu1 %v767_v35 }
 0x235   :  { %945 = vmatprep.mubr.msk.f32.mxu0 %vm1063_vm0, %v1062_v0  ;;  %953 = vmatprep.subr.mxu0 %v1062_v0 }
 0x236   :  { %960 = vmatprep.mubr.msk.f32.mxu1 %vm1063_vm0, %v1062_v0 }
 0x237   :  { %946 = vmatmul.mubr.msk.f32.vlgmr.msra.gmra.mrb[6].mxu0 %vm216_vm3, %v530_v40  ;;  %961 = vmatmul.mubr.msk.f32.vlgmr.msra.gmra.mrb[8].mxu1 %vm216_vm3, %v765_v41 }
 0x238   :  { %954 = vmatpush3.msra.mxu0 %v691_v39  ;;  %955 = vmatprep.mubr.msk.f32.mxu0 %vm1063_vm0, %v1062_v0 }
 0x23b   :  { %956 = vmatmul.mubr.msk.f32.vlgmr.msra.gmra.mrb[8].mxu0 %vm216_vm3, %v689_v42 }
 0x23c   :  { %1020 = shalt.err (!%p1017_p12)
}
 0x23d   :  { %s1021_s12 = scalar_lea.hbm %s1197_s4, 128 }
 0x23e   :  { %p1022_p13 = scmp.ne.s32.totalorder %s1197_s4, %s1021_s12  ;;  %p1025_p0 = scmp.lt.u32.totalorder %s1021_s12, %s1197_s4 }
 0x240   :  { %p1027_p1 = pnand %p1025_p0, %p1022_p13 }
 0x242   :  { %1030 = shalt.err (!%p1027_p1)
}
 0x243   :  { %s1069_s17 = smov 64   ;;  %s1070_s18 = smov 4   ;;  %vm366_vm4 = vcmask 1041409   ;;  %vm369_vm5 = vcmask 58368  }
 0x244   :  { %871 = dma.vmem_to_hbm [thread:$0]  %s866_s8, 128, %s1197_s4, [#allocation7], %s1069_s17, %s1069_s17, %s1070_s18  }
 0x245   :  { %s1071_s4 = smov [#allocation5]  }
 0x246   :  { %s853_s21 = sshll.u32 %s1071_s4, 4  ;;  %s854_s21 = int_to_ptr.vmem [resolvable:$true] %s853_s21 }
 0x247   :  { %s1031_s22 = scalar_lea.vmem %s854_s21, 128  ;;  %p1036_p3 = scmp.lt.s32.totalorder %s854_s21, %s854_s21 }
 0x248   :  { %p1032_p2 = scmp.ne.s32.totalorder %s854_s21, %s1031_s22  ;;  %p1037_p4 = scmp.lt.s32.totalorder %s1031_s22, %s1031_s22 }
 0x24a   :  { %p1038_p5 = por %p1037_p4, %p1036_p3 }
 0x24c   :  { %p1039_p6 = pnand %p1038_p5, %p1032_p2 }
 0x2fe   :  { %v359_v43 = vpop.f32.mrb[2].mxu1 }
 0x2ff   :  { %v932_v44 = vpop.f32.mrb[3].mxu1  ;;  %v365_v45 = vrot.slane %v359_v43, 7 }
 0x302   :  { %v286_v46 = vpop.f32.mrb[2].mxu0  ;;  %v519_v47 = vpop.f32.mrb[4].mxu1 }
 0x303   :  { %v367_v48 = vsel %vm366_vm4, %v365_v45, %v286_v46  ;;  %v927_v49 = vpop.f32.mrb[3].mxu0  ;;  %v942_v50 = vpop.f32.mrb[5].mxu1  ;;  %v525_v51 = vrot.slane %v519_v47, 7 }
 0x304   :  { %370 = vst.msk [vmem:[#allocation5] sm:$0x3] %vm369_vm5, %v367_v48 }
 0x306   :  { %v443_v52 = vpop.f32.mrb[4].mxu0  ;;  %v678_v53 = vpop.f32.mrb[6].mxu1 }
 0x307   :  { %v526_v54 = vsel %vm366_vm4, %v525_v51, %v443_v52  ;;  %v937_v55 = vpop.f32.mrb[5].mxu0  ;;  %v952_v56 = vpop.f32.mrb[7].mxu1  ;;  %v684_v57 = vrot.slane %v678_v53, 7 }
 0x308   :  { %529 = vst.msk [vmem:[#allocation5 + $0x2] sm:$0x3] %vm369_vm5, %v526_v54 }
 0x30a   :  { %v602_v58 = vpop.f32.mrb[6].mxu0  ;;  %v837_v59 = vpop.f32.mrb[8].mxu1 }
 0x30b   :  { %v685_v60 = vsel %vm366_vm4, %v684_v57, %v602_v58  ;;  %v947_v61 = vpop.f32.mrb[7].mxu0  ;;  %v962_v62 = vpop.f32.mrb[9].mxu1  ;;  %v843_v63 = vrot.slane %v837_v59, 7 }
 0x30c   :  { %688 = vst.msk [vmem:[#allocation5 + $0x4] sm:$0x3] %vm369_vm5, %v685_v60 }
 0x30e   :  { %v761_v0 = vpop.f32.mrb[8].mxu0 }
 0x30f   :  { %v844_v1 = vsel %vm366_vm4, %v843_v63, %v761_v0  ;;  %v957_v2 = vpop.f32.mrb[9].mxu0 }
 0x310   :  { %847 = vst.msk [vmem:[#allocation5 + $0x6] sm:$0x3] %vm369_vm5, %v844_v1 }
 0x311   :  { %1042 = shalt.err (!%p1039_p6)
}
 0x312   :  { %s1043_s25 = scalar_lea.hbm %s1196_s3, 128 }
 0x313   :  { %p1044_p7 = scmp.ne.s32.totalorder %s1196_s3, %s1043_s25  ;;  %p1047_p8 = scmp.lt.u32.totalorder %s1043_s25, %s1196_s3 }
 0x315   :  { %p1049_p9 = pnand %p1047_p8, %p1044_p7 }
 0x317   :  { %1052 = shalt.err (!%p1049_p9)
}
 0x318   :  { %s1072_s29 = smov 32   ;;  %s1073_s30 = smov 2  }
 0x319   :  { %859 = dma.vmem_to_hbm [thread:$0]  %s854_s21, 128, %s1196_s3, [#allocation4], %s1072_s29, %s1072_s29, %s1073_s30  }
 0x31a   :  { %1055 = dma.done.wait [#allocation4], 128  }
 0x31b   :  { %1056 = vsyncadd [#allocation4], 4294967168 }
 0x31c   :  { %1057 = dma.done.wait [#allocation7], 128  }
 0x31d   :  { %1058 = vsyncadd [#allocation7], 4294967168 }
 0x31e   :  { %878 = vsyncpa [#allocation3], 1 }
 0x31f   :  { %879 = vsyncpa [#allocation4], 1 }
 0x320   :  { %880 = vsyncpa [#allocation7], 1 }

</bundles_post_ra>
